<compile_context>
chip_gen: v7x
topology: tpu7x:2x2x1
jax: 0.10.0
libtpu: 0.0.40
codegen_flags: <defaults>
</compile_context>

<pallas_src>
import jax
import jax.numpy as jnp
from jax import lax
from jax.experimental import pallas as pl
from jax.experimental.pallas import tpu as pltpu


# ----------------------------------------------------------------------------
# Per-generation VMEM budget
# ----------------------------------------------------------------------------
def _vmem_budget_and_limit():
    phys = 64 * 1024 * 1024                      # conservative default (v7x)
    try:
        info = pltpu.get_tpu_info()
        phys = int(getattr(info, "vmem_capacity_bytes", phys) or phys)
    except Exception:
        pass
    limit = min(int(phys * 0.78), 100 * 1024 * 1024)
    budget = int(limit * 0.70)
    return budget, limit


_VMEM_BUDGET, _VMEM_LIMIT = _vmem_budget_and_limit()


def _divisors_desc(n):
    return [d for d in range(n, 0, -1) if n % d == 0]


def _pick_row_tile(h, est_bytes_fn, cap=256, prefer_even_count=False):
    divs = [d for d in _divisors_desc(h) if d >= 2 or d == h]
    small = [d for d in divs if d <= cap] or divs
    fitting = [d for d in small if est_bytes_fn(d) <= _VMEM_BUDGET]
    if not fitting:
        return small[-1]
    if prefer_even_count:
        even = [d for d in fitting if (h // d) % 2 == 0]
        if even:
            return even[0]
    return fitting[0]


# ----------------------------------------------------------------------------
# ConvTranspose2d(kernel=2, stride=2)
# ----------------------------------------------------------------------------
def conv_transpose_2x2(x, w_t, b_t, row_tile=None):
    """x: (N,H,W,Cin) f32/bf16.  w_t: torch layout (Cin,Cout,2,2).  b_t: (Cout,).

    Returns the upsampled activation (N, 2H, 2W, Cout) in bfloat16.
    """
    N, H, W, Cin = x.shape
    Cout = w_t.shape[1]
    C2 = 2 * Cout
    C4 = 4 * Cout
    in_b = jnp.dtype(x.dtype).itemsize

    def est(tr):
        return (2 * tr * W * Cin * in_b            # input block (double-buffered)
                + 2 * tr * 2 * W * C2 * 2          # output block (double-buffered)
                + tr * W * C4 * 4                  # f32 matmul result
                + 2 * Cin * C4 * 2 + (1 << 18))

    if row_tile is None:
        TR = _pick_row_tile(H, est, prefer_even_count=(N % 2 == 1))
    else:
        TR = int(row_tile)
        assert H % TR == 0, (H, TR)

    # wk[ci, ki*2*Cout + kj*Cout + co] = w_t[ci, co, ki, kj]  (single fused matmul)
    wk = jnp.transpose(w_t, (0, 2, 3, 1)).reshape(Cin, C4).astype(jnp.bfloat16)
    bk = jnp.tile(b_t.astype(jnp.float32), 4).reshape(1, C4)

    def kernel(x_ref, w_ref, b_ref, o_ref):
        xm = x_ref[0].reshape(TR * W, Cin).astype(jnp.bfloat16)
        y = jnp.dot(xm, w_ref[...], preferred_element_type=jnp.float32) + b_ref[...]
        for ki in range(2):       # lane-aligned slice when Cout is a multiple of 64
            yk = y[:, ki * C2:(ki + 1) * C2]
            o_ref[0, :, ki, :, :] = yk.reshape(TR, W, C2).astype(jnp.bfloat16)

    flops = 4 * N * H * W * Cin * C2
    bytes_accessed = x.size * in_b + N * H * 2 * W * C2 * 2 + Cin * C4 * 2

    out = pl.pallas_call(
        kernel,
        out_shape=jax.ShapeDtypeStruct((N, H, 2, W, C2), jnp.bfloat16),
        grid=(N, H // TR),
        in_specs=[
            pl.BlockSpec((1, TR, W, Cin), lambda n, r: (n, r, 0, 0)),
            pl.BlockSpec((Cin, C4), lambda n, r: (0, 0)),
            pl.BlockSpec((1, C4), lambda n, r: (0, 0)),
        ],
        out_specs=pl.BlockSpec((1, TR, 2, W, C2), lambda n, r: (n, r, 0, 0, 0)),
        compiler_params=pltpu.CompilerParams(
            dimension_semantics=("parallel", "parallel"),
            vmem_limit_bytes=_VMEM_LIMIT),
        cost_estimate=pl.CostEstimate(flops=int(flops), transcendentals=0,
                                      bytes_accessed=int(bytes_accessed)),
    )(x, wk, bk)

    # (N, H, 2, W, 2*Cout) -> (N, 2H, 2W, Cout): contiguous -> free reshape.
    return out.reshape(N, 2 * H, 2 * W, Cout)


# ----------------------------------------------------------------------------
# Fused concat + DoubleConv (Conv3x3 no-bias + BN + ReLU, twice)
# ----------------------------------------------------------------------------
def _fold_bn(bn, eps=1e-5):
    scale = bn["gamma"] / jnp.sqrt(bn["var"] + eps)
    bias = bn["beta"] - bn["mean"] * scale
    return scale, bias


def double_conv(skip, x_up, w1_pt, bn1, w2_pt, bn2,
                out_dtype=jnp.bfloat16, row_tile=None):
    """skip: (N,H,W,Cs) bf16 (expected already bf16 in HBM), x_up: (N,H,W,Cx)
    bf16.  Torch weights (Cmid, Cs+Cx, 3, 3) / (Cout, Cmid, 3, 3), no bias.
    Output (N,H,W,Cout) in `out_dtype`."""
    skip = skip.astype(jnp.bfloat16)     # no-op if the encoder already emits bf16
    x_up = x_up.astype(jnp.bfloat16)
    N, H, W, Cs = skip.shape
    Nx, Hx, Wx, Cx = x_up.shape
    assert (N, H, W) == (Nx, Hx, Wx), "TODO(synk): TF.resize branch not implemented"
    Cmid = w1_pt.shape[0]
    Cout = w2_pt.shape[0]
    Cc = Cs + Cx
    assert w1_pt.shape[1] == Cc
    out_b = jnp.dtype(out_dtype).itemsize

    def est(th):
        return int(1.15 * (
            2 * (th + 4) * (W + 2) * (Cs + Cx) * 2   # double-buffered halo windows
            + (th + 4) * W * 3 * Cc * 2              # dx-stacked conv1 slab
            + (th + 2) * (W + 2) * Cmid * 2          # padded conv1 output
            + (th + 2) * W * 3 * Cmid * 2            # dx-stacked conv2 slab
            + (th + 2) * W * Cmid * 6                # conv1 f32 acc + bf16 h value
            + th * W * Cout * 4                      # conv2 f32 acc
            + 2 * th * W * Cout * out_b              # output block (double-buffered)
            + 4 * 9 * (Cc * Cmid + Cmid * Cout)      # bf16 weights x 2 buffers
            + (1 << 20)))

    if row_tile is None:
        TH = _pick_row_tile(H, est)
    else:
        TH = int(row_tile)
        assert H % TH == 0 and (TH >= 2 or TH == H), (H, TH)
    n_tiles = H // TH
    last_slot = (n_tiles - 1) % 2

    # torch (Cmid, Cc, 3, 3) -> per-dy, dx-stacked weights (3, 3*Cc, Cmid).
    # Channel order inside each dx block is [skip, upsampled] == torch.cat order.
    w1k = jnp.transpose(w1_pt, (2, 3, 1, 0)).reshape(3, 3 * Cc, Cmid).astype(jnp.bfloat16)
    w2k = jnp.transpose(w2_pt, (2, 3, 1, 0)).reshape(3, 3 * Cmid, Cout).astype(jnp.bfloat16)
    s1, b1 = _fold_bn(bn1)
    s2, b2 = _fold_bn(bn2)
    s1 = s1.reshape(1, Cmid).astype(jnp.float32)
    b1 = b1.reshape(1, Cmid).astype(jnp.float32)
    s2 = s2.reshape(1, Cout).astype(jnp.float32)
    b2 = b2.reshape(1, Cout).astype(jnp.float32)

    def kernel(skip_hbm, x_hbm, w1_ref, s1_ref, b1_ref, w2_ref, s2_ref, b2_ref,
               o_ref, spad, xpad, hpad, cslab, hslab, sem):
        n = pl.program_id(0)
        r = pl.program_id(1)
        slot = r % 2                       # window (n, r) always lives in slot r % 2
        row0 = pl.multiple_of(r * TH, TH)

        # ---- halo-window DMAs (double-buffered across the inner grid axis) ----
        def dma_window(action, rr, sl):
            rw0 = rr * TH
            top = jnp.maximum(rw0 - 2, 0)
            bot = jnp.minimum(rw0 + TH, H - 2)
            for hbm, dst, sb in ((skip_hbm, spad, 0), (x_hbm, xpad, 3)):
                main_cp = pltpu.make_async_copy(
                    hbm.at[n, pl.ds(rw0, TH), :, :],
                    dst.at[sl, pl.ds(2, TH), pl.ds(1, W), :], sem.at[sl, sb + 0])
                top_cp = pltpu.make_async_copy(
                    hbm.at[n, pl.ds(top, 2), :, :],
                    dst.at[sl, pl.ds(0, 2), pl.ds(1, W), :], sem.at[sl, sb + 1])
                bot_cp = pltpu.make_async_copy(
                    hbm.at[n, pl.ds(bot, 2), :, :],
                    dst.at[sl, pl.ds(TH + 2, 2), pl.ds(1, W), :], sem.at[sl, sb + 2])
                getattr(main_cp, action)()

                @pl.when(rr > 0)
                def _():
                    getattr(top_cp, action)()

                @pl.when(rr < n_tiles - 1)
                def _():
                    getattr(bot_cp, action)()

        def zero_halo_rows(rr):
            # Halo rows outside the image.  Slots are static Python ints because
            # window r always maps to slot r % 2.
            @pl.when(rr == 0)
            def _():
                spad[0, 0:2, :, :] = jnp.zeros((2, W + 2, Cs), jnp.bfloat16)
                xpad[0, 0:2, :, :] = jnp.zeros((2, W + 2, Cx), jnp.bfloat16)

            @pl.when(rr == n_tiles - 1)
            def _():
                spad[last_slot, TH + 2:TH + 4, :, :] = jnp.zeros((2, W + 2, Cs), jnp.bfloat16)
                xpad[last_slot, TH + 2:TH + 4, :, :] = jnp.zeros((2, W + 2, Cx), jnp.bfloat16)

        @pl.when(r == 0)
        def _():
            # Border columns (0 and W+1) are never written by DMAs or stores, so
            # zeroing them once per image covers every window of this image.
            for sl in range(2):
                spad[sl, :, 0:1, :] = jnp.zeros((TH + 4, 1, Cs), jnp.bfloat16)
                spad[sl, :, W + 1:W + 2, :] = jnp.zeros((TH + 4, 1, Cs), jnp.bfloat16)
                xpad[sl, :, 0:1, :] = jnp.zeros((TH + 4, 1, Cx), jnp.bfloat16)
                xpad[sl, :, W + 1:W + 2, :] = jnp.zeros((TH + 4, 1, Cx), jnp.bfloat16)
            hpad[:, 0:1, :] = jnp.zeros((TH + 2, 1, Cmid), jnp.bfloat16)
            hpad[:, W + 1:W + 2, :] = jnp.zeros((TH + 2, 1, Cmid), jnp.bfloat16)
            # prologue: start window (n, 0)
            zero_halo_rows(r)
            dma_window("start", r, slot)

        @pl.when(r + 1 < n_tiles)                 # prefetch next window
        def _():
            zero_halo_rows(r + 1)
            dma_window("start", r + 1, 1 - slot)

        dma_window("wait", r, slot)

        # ---- fused concat + dx-stacked im2col slab for conv1 ------------------
        sv = spad[slot]                            # (TH+4, W+2, Cs)
        xv = xpad[slot]                            # (TH+4, W+2, Cx)
        cslab[...] = jnp.concatenate(
            [sv[:, 0:W, :], xv[:, 0:W, :],         # dx = 0
             sv[:, 1:W + 1, :], xv[:, 1:W + 1, :], # dx = 1
             sv[:, 2:W + 2, :], xv[:, 2:W + 2, :]], axis=-1)

        # ---- Conv1 (3 taps, K = 3*(Cs+Cx)) + BN1 + ReLU ------------------------
        acc = None
        for dy in range(3):
            inp = cslab[dy:dy + TH + 2, :, :].reshape((TH + 2) * W, 3 * Cc)
            c = jnp.dot(inp, w1_ref[dy], preferred_element_type=jnp.float32)
            acc = c if acc is None else acc + c
        h = jnp.maximum(acc * s1_ref[...] + b1_ref[...], 0.0)
        h = h.reshape(TH + 2, W, Cmid)
        # rows of h outside the image are conv2's zero row-padding
        gr = row0 - 1 + lax.broadcasted_iota(jnp.int32, (TH + 2, 1, 1), 0)
        h = jnp.where((gr >= 0) & (gr < H), h, 0.0).astype(jnp.bfloat16)
        hpad[:, 1:W + 1, :] = h

        hv = hpad[...]                             # (TH+2, W+2, Cmid)
        hslab[...] = jnp.concatenate(
            [hv[:, 0:W, :], hv[:, 1:W + 1, :], hv[:, 2:W + 2, :]], axis=-1)

        # ---- Conv2 (3 taps, K = 3*Cmid) + BN2 + ReLU ---------------------------
        acc2 = None
        for dy in range(3):
            inp = hslab[dy:dy + TH, :, :].reshape(TH * W, 3 * Cmid)
            c = jnp.dot(inp, w2_ref[dy], preferred_element_type=jnp.float32)
            acc2 = c if acc2 is None else acc2 + c
        y = jnp.maximum(acc2 * s2_ref[...] + b2_ref[...], 0.0)
        o_ref[0] = y.reshape(TH, W, Cout).astype(o_ref.dtype)

    flops = 2 * N * H * W * 9 * (Cc * Cmid + Cmid * Cout)
    bytes_accessed = (skip.size * 2 + x_up.size * 2 + N * H * W * Cout * out_b
                      + 9 * (Cc * Cmid + Cmid * Cout) * 2)

    return pl.pallas_call(
        kernel,
        out_shape=jax.ShapeDtypeStruct((N, H, W, Cout), out_dtype),
        grid=(N, n_tiles),
        in_specs=[
            pl.BlockSpec(memory_space=pl.ANY),                        # skip (HBM)
            pl.BlockSpec(memory_space=pl.ANY),                        # x_up (HBM)
            pl.BlockSpec((3, 3 * Cc, Cmid), lambda n, r: (0, 0, 0)),
            pl.BlockSpec((1, Cmid), lambda n, r: (0, 0)),
            pl.BlockSpec((1, Cmid), lambda n, r: (0, 0)),
            pl.BlockSpec((3, 3 * Cmid, Cout), lambda n, r: (0, 0, 0)),
            pl.BlockSpec((1, Cout), lambda n, r: (0, 0)),
            pl.BlockSpec((1, Cout), lambda n, r: (0, 0)),
        ],
        out_specs=pl.BlockSpec((1, TH, W, Cout), lambda n, r: (n, r, 0, 0)),
        scratch_shapes=[
            pltpu.VMEM((2, TH + 4, W + 2, Cs), jnp.bfloat16),   # skip window x2 slots
            pltpu.VMEM((2, TH + 4, W + 2, Cx), jnp.bfloat16),   # upsample window x2
            pltpu.VMEM((TH + 2, W + 2, Cmid), jnp.bfloat16),    # padded conv1 output
            pltpu.VMEM((TH + 4, W, 3 * Cc), jnp.bfloat16),      # conv1 dx-stacked slab
            pltpu.VMEM((TH + 2, W, 3 * Cmid), jnp.bfloat16),    # conv2 dx-stacked slab
            pltpu.SemaphoreType.DMA((2, 6)),
        ],
        compiler_params=pltpu.CompilerParams(
            dimension_semantics=("parallel", "arbitrary"),
            vmem_limit_bytes=_VMEM_LIMIT),
        cost_estimate=pl.CostEstimate(flops=int(flops), transcendentals=0,
                                      bytes_accessed=int(bytes_accessed)),
    )(skip, x_up, w1k, s1, b1, w2k, s2, b2)


# ----------------------------------------------------------------------------
# Decoder forward
# ----------------------------------------------------------------------------
def decoder_forward(x, skip_connections, params, dc_row_tile=None, ct_row_tile=None):
    """Mirrors Decoder.forward (inference).  x, skips in NHWC; skips expected
    bf16 (encoder output).  Final level is f32, intermediate levels bf16."""
    n_lvl = len(params)
    for lvl, p in enumerate(params):
        x = conv_transpose_2x2(x, p["wt"], p["bt"], row_tile=ct_row_tile)
        skip = skip_connections[lvl]
        # TODO(synk): TF.resize branch (spatial shape mismatch) not implemented.
        out_dtype = jnp.float32 if lvl == n_lvl - 1 else jnp.bfloat16
        x = double_conv(skip, x, p["w1"], p["bn1"], p["w2"], p["bn2"],
                        out_dtype=out_dtype, row_tile=dc_row_tile)
    return x


# ----------------------------------------------------------------------------
# Pure-JAX reference (lax convolutions) for validation
# ----------------------------------------------------------------------------
def _ref_convt(x, w_t, b_t):
    w = jnp.transpose(w_t, (2, 3, 0, 1))[::-1, ::-1]  # flipped, HWIO
    y = lax.conv_general_dilated(
        x, w, window_strides=(1, 1), padding=((1, 1), (1, 1)),
        lhs_dilation=(2, 2), dimension_numbers=("NHWC", "HWIO", "NHWC"),
        precision=lax.Precision.HIGHEST)
    return y + b_t


def _ref_conv3x3(x, w_pt):
    w = jnp.transpose(w_pt, (2, 3, 1, 0))
    return lax.conv_general_dilated(
        x, w, (1, 1), "SAME", dimension_numbers=("NHWC", "HWIO", "NHWC"),
        precision=lax.Precision.HIGHEST)


def _ref_bn_relu(x, bn):
    s, b = _fold_bn(bn)
    return jnp.maximum(x * s + b, 0.0)


def decoder_forward_ref(x, skip_connections, params):
    for lvl, p in enumerate(params):
        x = _ref_convt(x, p["wt"], p["bt"])
        x = jnp.concatenate([skip_connections[lvl], x], axis=-1)
        x = _ref_bn_relu(_ref_conv3x3(x, p["w1"]), p["bn1"])
        x = _ref_bn_relu(_ref_conv3x3(x, p["w2"]), p["bn2"])
    return x


# ----------------------------------------------------------------------------
# Deterministic parameter / input construction
# ----------------------------------------------------------------------------
def _make_bn(key, c):
    k1, k2, k3, k4 = jax.random.split(key, 4)
    return {
        "gamma": 1.0 + 0.1 * jax.random.normal(k1, (c,), jnp.float32),
        "beta": 0.1 * jax.random.normal(k2, (c,), jnp.float32),
        "mean": 0.1 * jax.random.normal(k3, (c,), jnp.float32),
        "var": jax.random.uniform(k4, (c,), jnp.float32, 0.5, 1.5),
    }


def make_params(key, features):
    params = []
    for feat in reversed(features):
        ks = jax.random.split(key, 8)
        key = ks[0]
        params.append({
            # ConvTranspose2d(feat*2, feat, 2, 2): torch weight (Cin,Cout,2,2)
            "wt": 0.1 * jax.random.normal(ks[1], (feat * 2, feat, 2, 2), jnp.float32),
            "bt": 0.1 * jax.random.normal(ks[2], (feat,), jnp.float32),
            # DoubleConv(feat*2, feat): torch weights (Cout,Cin,3,3), no bias
            "w1": 0.1 * jax.random.normal(ks[3], (feat, feat * 2, 3, 3), jnp.float32),
            "bn1": _make_bn(ks[4], feat),
            "w2": 0.1 * jax.random.normal(ks[5], (feat, feat, 3, 3), jnp.float32),
            "bn2": _make_bn(ks[6], feat),
        })
    return params


if __name__ == "__main__":
    key = jax.random.PRNGKey(0)
    features = [8, 16]          # small stand-in for [64,128,256,512]
    N = 2
    H0, W0 = 4, 4               # bottleneck spatial size

    k_x, k_s0, k_s1, k_p = jax.random.split(key, 4)
    # bottleneck: channels = features[-1]*2 = 32  (NHWC), bf16 as produced upstream
    x = jax.random.normal(k_x, (N, H0, W0, features[-1] * 2),
                          jnp.float32).astype(jnp.bfloat16)
    # encoder skip connections (bf16 in HBM), ordered deep -> shallow
    skips = [
        jax.random.normal(k_s0, (N, 2 * H0, 2 * W0, 16), jnp.float32).astype(jnp.bfloat16),
        jax.random.normal(k_s1, (N, 4 * H0, 4 * W0, 8), jnp.float32).astype(jnp.bfloat16),
    ]
    params = make_params(k_p, features)

    # Small explicit row tiles so the multi-tile / double-buffered halo-DMA
    # path (prefetch + slot alternation) is exercised at both levels.
    out = jax.block_until_ready(
        decoder_forward(x, skips, params, dc_row_tile=4, ct_row_tile=4))
    ref = jax.block_until_ready(decoder_forward_ref(
        x.astype(jnp.float32), [s.astype(jnp.float32) for s in skips], params))

    assert out.shape == (N, 4 * H0, 4 * W0, features[0]), out.shape
    err = float(jnp.max(jnp.abs(out.astype(jnp.float32) - ref)))
    tol = 4e-2 * (1.0 + float(jnp.max(jnp.abs(ref))))   # bf16 activations, f32 acc
    assert err < tol, f"max abs err {err} (tol {tol})"
    print("KERNEL_OK")
</pallas_src>

<mosaic_0001>
module attributes {stable_mosaic.version = 11 : i64} {
  func.func @kernel(%arg0: i32, %arg1: i32, %arg2: memref<1x4x4x32xbf16, #tpu.memory_space<vmem>>, %arg3: memref<32x64xbf16, #tpu.memory_space<vmem>>, %arg4: memref<1x64xf32, #tpu.memory_space<vmem>>, %arg5: memref<1x4x2x4x32xbf16, #tpu.memory_space<vmem>>) attributes {dimension_semantics = [#tpu.dimension_semantics<parallel>, #tpu.dimension_semantics<parallel>], iteration_bounds = array<i64: 2, 1>, scalar_prefetch = 0 : i64, scratch_operands = 0 : i64, tpu.core_type = #tpu.core_type<tc>, window_params = [{transform_indices = @transform_0, window_bounds = array<i64: 1, 4, 4, 32>}, {pipeline_mode = #tpu.pipeline_mode<synchronous>, transform_indices = @transform_1, window_bounds = array<i64: 32, 64>}, {pipeline_mode = #tpu.pipeline_mode<synchronous>, transform_indices = @transform_2, window_bounds = array<i64: 1, 64>}, {transform_indices = @transform_3, window_bounds = array<i64: 1, 4, 2, 4, 32>}]} {
    %c0 = arith.constant 0 : index
    %c0_0 = arith.constant 0 : index
    %c0_1 = arith.constant 0 : index
    %c0_2 = arith.constant 0 : index
    %0 = vector.load %arg2[%c0, %c0_0, %c0_1, %c0_2] : memref<1x4x4x32xbf16, #tpu.memory_space<vmem>>, vector<1x4x4x32xbf16>
    %1 = vector.shape_cast %0 : vector<1x4x4x32xbf16> to vector<4x4x32xbf16>
    %2 = vector.shape_cast %1 : vector<4x4x32xbf16> to vector<16x32xbf16>
    %c0_3 = arith.constant 0 : index
    %c0_4 = arith.constant 0 : index
    %3 = vector.load %arg3[%c0_3, %c0_4] : memref<32x64xbf16, #tpu.memory_space<vmem>>, vector<32x64xbf16>
    %cst = arith.constant dense<0.000000e+00> : vector<16x64xf32>
    %4 = tpu.matmul %2, %3, %cst {dimension_numbers = #tpu.dot_dimension_numbers<[1], [0], [0], [1], [0, 0, 1, 1], [], []>} : vector<16x32xbf16>, vector<32x64xbf16>, vector<16x64xf32> -> vector<16x64xf32>
    %c0_5 = arith.constant 0 : index
    %c0_6 = arith.constant 0 : index
    %5 = vector.load %arg4[%c0_5, %c0_6] : memref<1x64xf32, #tpu.memory_space<vmem>>, vector<1x64xf32>
    %6 = vector.broadcast %5 : vector<1x64xf32> to vector<16x64xf32>
    %7 = arith.addf %4, %6 : vector<16x64xf32>
    %8 = vector.extract_strided_slice %7 {offsets = [0, 0], sizes = [16, 32], strides = [1, 1]} : vector<16x64xf32> to vector<16x32xf32>
    %9 = vector.shape_cast %8 : vector<16x32xf32> to vector<4x4x32xf32>
    %10 = arith.truncf %9 : vector<4x4x32xf32> to vector<4x4x32xbf16>
    %c0_7 = arith.constant 0 : index
    %c0_8 = arith.constant 0 : index
    %c0_9 = arith.constant 0 : index
    %c0_10 = arith.constant 0 : index
    %c0_11 = arith.constant 0 : index
    %11 = vector.load %arg5[%c0_7, %c0_8, %c0_9, %c0_10, %c0_11] : memref<1x4x2x4x32xbf16, #tpu.memory_space<vmem>>, vector<1x4x1x4x32xbf16>
    %12 = vector.shape_cast %11 : vector<1x4x1x4x32xbf16> to vector<4x4x32xbf16>
    %13 = vector.shape_cast %10 : vector<4x4x32xbf16> to vector<1x4x1x4x32xbf16>
    tpu.vector_store %arg5[%c0_7, %c0_8, %c0_9, %c0_10, %c0_11], %13 {strides = array<i32>} : memref<1x4x2x4x32xbf16, #tpu.memory_space<vmem>>, vector<1x4x1x4x32xbf16>,
    %14 = vector.extract_strided_slice %7 {offsets = [0, 32], sizes = [16, 32], strides = [1, 1]} : vector<16x64xf32> to vector<16x32xf32>
    %15 = vector.shape_cast %14 : vector<16x32xf32> to vector<4x4x32xf32>
    %16 = arith.truncf %15 : vector<4x4x32xf32> to vector<4x4x32xbf16>
    %c0_12 = arith.constant 0 : index
    %c0_13 = arith.constant 0 : index
    %c1 = arith.constant 1 : index
    %c0_14 = arith.constant 0 : index
    %c0_15 = arith.constant 0 : index
    %17 = vector.load %arg5[%c0_12, %c0_13, %c1, %c0_14, %c0_15] : memref<1x4x2x4x32xbf16, #tpu.memory_space<vmem>>, vector<1x4x1x4x32xbf16>
    %18 = vector.shape_cast %17 : vector<1x4x1x4x32xbf16> to vector<4x4x32xbf16>
    %19 = vector.shape_cast %16 : vector<4x4x32xbf16> to vector<1x4x1x4x32xbf16>
    tpu.vector_store %arg5[%c0_12, %c0_13, %c1, %c0_14, %c0_15], %19 {strides = array<i32>} : memref<1x4x2x4x32xbf16, #tpu.memory_space<vmem>>, vector<1x4x1x4x32xbf16>,
    return
  }
  func.func @transform_0(%arg0: i32, %arg1: i32) -> (i32, i32, i32, i32) {
    %c0_i32 = arith.constant 0 : i32
    %c0_i32_0 = arith.constant 0 : i32
    %c0_i32_1 = arith.constant 0 : i32
    return %arg0, %arg1, %c0_i32, %c0_i32_0 : i32, i32, i32, i32
  }
  func.func @transform_1(%arg0: i32, %arg1: i32) -> (i32, i32) {
    %c0_i32 = arith.constant 0 : i32
    %c0_i32_0 = arith.constant 0 : i32
    %c0_i32_1 = arith.constant 0 : i32
    return %c0_i32, %c0_i32_0 : i32, i32
  }
  func.func @transform_2(%arg0: i32, %arg1: i32) -> (i32, i32) {
    %c0_i32 = arith.constant 0 : i32
    %c0_i32_0 = arith.constant 0 : i32
    %c0_i32_1 = arith.constant 0 : i32
    return %c0_i32, %c0_i32_0 : i32, i32
  }
  func.func @transform_3(%arg0: i32, %arg1: i32) -> (i32, i32, i32, i32, i32) {
    %c0_i32 = arith.constant 0 : i32
    %c0_i32_0 = arith.constant 0 : i32
    %c0_i32_1 = arith.constant 0 : i32
    %c0_i32_2 = arith.constant 0 : i32
    return %arg0, %arg1, %c0_i32, %c0_i32_0, %c0_i32_1 : i32, i32, i32, i32, i32
  }
}

</mosaic_0001>

<bundles_post_ra>
// kernel: tpu_custom_call.1
= control target key start
LH: loop header
LB: loop body
LE: loop exit
PB: predicated region body
PF: predicated region fallthrough
CT: control target
= control target key end

     0   :  { %8 = vsyncpa [#allocation3], 0  ;;  %s1029_s0 = inlined_call_operand.hbm [shape: bf16[2,4,4,32], index: 0, kind: input, shape index: {}]   ;;  %s1030_s1 = inlined_call_operand.hbm [shape: bf16[32,64], index: 1, kind: input, shape index: {}]   ;;  %s1031_s2 = inlined_call_operand.vmem [shape: f32[1,64], index: 2, kind: input, shape index: {}]   ;;  %s1032_s3 = inlined_call_operand.hbm [shape: bf16[2,4,2,4,32], index: 3, kind: output, shape index: {}]  }
   0x1   :  { %10 = vsyncpa [#allocation3 + $0x1], 0 }
   0x2   :  { %11 = vsyncpa [#allocation6], 0 }
   0x3   :  { %12 = vsyncpa [#allocation4], 0 }
   0x4   :  { %14 = vsyncpa [#allocation4 + $0x1], 0  ;;  %s798_s12 = smov 0   ;;  %s800_s13 = smov 0  }
   0x5   :  { %s802_s14 = smov 0   ;;  %s804_s15 = smov 0  }
   0x6   :  { %s806_s16 = smov 0   ;;  %s808_s17 = smov 0  }
   0x7 LB: > { %s496_s18 = sadd.s32 4294967295, %s763_s17   ;;  %s497_s19 = sadd.s32 4294967294, %s763_s17   ;;  %s763_s17 = sphi %s808_s17, %s20_s17   ;;  %s759_s16 = sphi %s806_s16, %s1056_s16   ;;  %s755_s15 = sphi %s804_s15, %s1055_s15   ;;  %s751_s14 = sphi %s802_s14, %s1054_s14   ;;  %s747_s13 = sphi %s800_s13, %s1053_s13   ;;  %s743_s12 = sphi %s798_s12, %s1052_s12  }
   0x8   : > { %p54_p0 = scmp.ne.s32.totalorder %s747_s13, %s743_s12  ;;  %p832_p1 = scmp.eq.s32.totalorder %s496_s18, 0 }
   0x9   : > { %p836_p2 = scmp.eq.s32.totalorder %s496_s18, 1  ;;  %p128_p3 = scmp.eq.s32.totalorder %s497_s19, 1 }
   0xa   : > { %s1037_s20 = scalar_select %p832_p1, 1, 0 }
   0xb   : > { %s1038_s21 = scalar_select %p836_p2, 1, 0 }
   0xc   : > { %p842_p4 = por %p832_p1, %p54_p0  ;;  %p498_p5 = scmp.ge.s32.totalorder %s763_s17, 1 }
   0xd   : > { %p847_p6 = por %p128_p3, %p54_p0  ;;  %p135_p7 = scmp.lt.s32.totalorder %s763_s17, 3 }
   0xe   : > { %s1039_s22 = scalar_select %p842_p4, 1, 0 }
   0xf   : > { %s1040_s23 = scalar_select %p847_p6, 1, 0 }
  0x10   : > { %p852_p8 = pnand %p498_p5, %p135_p7  ;;  %s765_s25 = smov [#allocation5]  }
  0x11   : > { %s147_s26 = sshll.u32 %s765_s25, 4  ;;  %s32_s28 = sadd.s32 1, %s759_s16  ;;  %s148_s26 = int_to_ptr.vmem [resolvable:$true] %s147_s26 }
  0x12   : > { %s1041_s24 = scalar_select %p852_p8, 1, 0 }
  0x13   : > { %p542_p9 = pneg %p852_p8  ;;  %s619_s4 = scalar_lea.hbm %s1030_s1, 256 }
  0x14   : > { %p620_p12 = scmp.ne.s32.totalorder %s1030_s1, %s619_s4  ;;  %p626_p5 = scmp.lt.u32.totalorder %s619_s4, %s1030_s1 }
  0x15   : > { %p861_p11 = pnand %p542_p9, %p832_p1 }
  0x17   : > { %p621_p13 = pneg %p861_p11 }
  0x19   : > { %p622_p0 = pnand %p621_p13, %p620_p12 }
  0x1b   : > { %p623_p3 = pneg %p622_p0 }
  0x1d   : > { %p628_p7 = pnand %p626_p5, %p623_p3 }
  0x1f   : > { %631 = shalt.err (!%p628_p7)
}
  0x20   : > { %s632_s9 = scalar_lea.vmem %s148_s26, 256  ;;  %p640_p1 = scmp.lt.s32.totalorder %s148_s26, %s148_s26 }
  0x21   : > { %p633_p9 = scmp.ne.s32.totalorder %s148_s26, %s632_s9  ;;  %p641_p4 = scmp.lt.s32.totalorder %s632_s9, %s632_s9 }
  0x23   : > { %p635_p10 = pnand %p633_p9, %p621_p13  ;;  %p642_p8 = por %p641_p4, %p640_p1 }
  0x25   : > { %p636_p6 = pneg %p635_p10 }
  0x27   : > { %p643_p2 = pnand %p642_p8, %p636_p6 }
  0x29   : > { %646 = shalt.err (!%p643_p2)
}
  0x2a   : > { %s766_s10 = smov 64   ;;  %s767_s11 = smov 4  }
  0x2b   : > { %545 = dma.hbm_to_vmem [thread:$0]  (!%p861_p11), %s1030_s1, 256, %s148_s26, [#allocation6], %s766_s10, %s766_s10, %s767_s11  }
  0x2c   : > { %p34_p1 = scmp.ge.s32.totalorder %s32_s28, 2  ;;  %s41_s25 = sadd.s32 1, %s751_s14 }
  0x2d   : > { %p48_p2 = scmp.ne.s32.totalorder %s751_s14, %s747_s13  ;;  %p49_p4 = scmp.eq.s32.totalorder %s763_s17, 0 }
  0x2e   : > { %s1058_s28 = smov (%p34_p1, %s32_s28), 0  ;;  %p1044_p8 = scmp.ne.s32.totalorder %s1038_s21, 0 }
  0x2f   : > { %p888_p6 = por %p49_p4, %p48_p2  ;;  %s36_s27 = ssub.s32 %s759_s16, %s1058_s28 }
  0x30   : > { %p894_p10 = por %p1044_p8, %p48_p2  ;;  %p555_p12 = scmp.lt.s32.totalorder %s763_s17, 2 }
  0x31   : > { %p39_p11 = scmp.eq.s32.totalorder %s36_s27, 0  ;;  %s164_s26 = sand.u32 1, %s751_s14  }
  0x32   : > { %s501_s4 = sshll.u32 %s164_s26, 3  ;;  %s521_s6 = sshll.u32 %s759_s16, 7 }
  0x33   : > { %s903_s5 = scalar_select %p39_p11, %s751_s14, %s41_s25  }
  0x34   : > { %s909_s9 = scalar_lea.hbm %s1029_s0, %s521_s6  ;;  %s168_s21 = scalar_lea.vmem [#allocation2], %s501_s4 }
  0x35   : > { %s177_s10 = sshll.u32 %s168_s21, 4  ;;  %p915_p13 = pnand %p555_p12, %p888_p6  ;;  %s911_s10 = int_to_ptr.vmem [resolvable:$true] %s177_s10 }
  0x36   : > { %s919_s18 = scalar_lea.sflag [#allocation3], %s164_s26  ;;  %s647_s19 = scalar_lea.hbm %s909_s9, 128 }
  0x37   : > { %p648_p0 = scmp.ne.s32.totalorder %s909_s9, %s647_s19  ;;  %p649_p3 = pneg %p915_p13 }
  0x38   : > { %s652_s29 = scalar_lea.hbm %s1029_s0, 256  ;;  %p653_p9 = scmp.lt.u32.totalorder %s909_s9, %s1029_s0 }
  0x39   : > { %p650_p5 = pnand %p649_p3, %p648_p0  ;;  %p654_p1 = scmp.lt.u32.totalorder %s652_s29, %s647_s19 }
  0x3a   : > { %p656_p4 = scmp.lt.u32.totalorder %s647_s19, %s909_s9 }
  0x3b   : > { %p651_p7 = pneg %p650_p5  ;;  %p655_p2 = por %p654_p1, %p653_p9 }
  0x3d   : > { %p657_p6 = por %p656_p4, %p655_p2 }
  0x3f   : > { %p658_p8 = pnand %p657_p6, %p651_p7 }
  0x41   : > { %661 = shalt.err (!%p658_p8)
}
  0x42   : > { %s662_s26 = scalar_lea.vmem %s911_s10, 128  ;;  %s768_s7 = smov [#allocation2]  }
  0x43   : > { %p663_p12 = scmp.ne.s32.totalorder %s911_s10, %s662_s26  ;;  %s667_s8 = sshll.u32 %s768_s7, 4  ;;  %s668_s8 = int_to_ptr.vmem [resolvable:$false] %s667_s8 }
  0x44   : > { %s669_s21 = scalar_lea.vmem %s668_s8, 256  ;;  %p670_p5 = scmp.lt.s32.totalorder %s911_s10, %s668_s8 }
  0x45   : > { %p665_p11 = pnand %p663_p12, %p649_p3  ;;  %p671_p9 = scmp.lt.s32.totalorder %s669_s21, %s662_s26 }
  0x47   : > { %p666_p0 = pneg %p665_p11  ;;  %p672_p1 = por %p671_p9, %p670_p5 }
  0x49   : > { %p673_p2 = pnand %p672_p1, %p666_p0 }
  0x4b   : > { %676 = shalt.err (!%p673_p2)
}
  0x4c   : > { %s769_s19 = smov 32   ;;  %s770_s25 = smov 2  }
  0x4d   : > { %549 = dma.hbm_to_vmem [thread:$0]  (!%p915_p13), %s909_s9, 128, %s911_s10, %s919_s18, %s769_s19, %s769_s19, %s770_s25  }
  0x4e   : > { %p1047_p3 = scmp.ne.s32.totalorder %s1041_s24, 0 }
  0x4f   : > { %s950_s27 = sand.u32 (!%p1047_p3), 1, %s747_s13   ;;  %p1048_p7 = scmp.ne.s32.totalorder (!%p1047_p3), %s1039_s22, 0 }
  0x50   : > { %189 = sbr.rel (%p1047_p3) target bundleno = 456 (0x1c8), region = 32  ;;  %s505_s29 = sshll.u32 (!%p1047_p3), %s950_s27, 3 }
  0x51   : > { %s192_s4 = scalar_lea.sflag (!%p1047_p3), [#allocation3], %s950_s27  ;;  %s195_s6 = scalar_lea.vmem (!%p1047_p3), [#allocation2], %s505_s29 }
  0x57   : > { %730 = dma.done.wait (%p1048_p7), %s192_s4, 128  }
  0x58   : > { %732 = vsyncadd (%p1048_p7), %s192_s4, 4294967168  ;;  %p1049_p4 = scmp.ne.s32.totalorder %s1037_s20, 0 }
  0x5a   : > { %734 = dma.done.wait (%p1049_p4), [#allocation6], 256  }
  0x5b   : > { %736 = vsyncadd (%p1049_p4), [#allocation6], 4294967040  ;;  %v249_v0 = vlaneseq  ;;  %v771_v1 = vmov 0.0   ;;  %vm772_vm0 = vmmov 0   ;;  %v773_v2 = vmov 1983009808  }
  0x5c   : > { %526 = vmatprep.subr.bf16.mxu0 %v771_v1  ;;  %530 = vmatprep.mubr.msk.bf16.mxu0 %vm772_vm0, %v771_v1  ;;  %v247_v3 = vunpack.c.l.s4 %v773_v2  ;;  %v617_v6 = vld [vmem:[#allocation5] sm:$0xff]   ;;  %v618_v7 = vld [vmem:[#allocation5 + $0x8] sm:$0xff]   ;;  %v225_v9 = vld [vmem:[%s195_s6] sm:$0x3]  ;;  %vm273_vm1 = vcmask 261120   ;;  %s507_s24 = sshll.u32 %s950_s27, 4 }
  0x5d   : > { %v250_v5 = vshrl.u32 %v249_v0, 7  ;;  %527 = vmatpush3.bf16.msra.mxu0 %v617_v6  ;;  %v226_v10 = vld [vmem:[%s195_s6 + $0x2] sm:$0x3]  ;;  %v227_v11 = vld [vmem:[%s195_s6 + $0x4] sm:$0x3]  ;;  %vm328_vm2 = vcmask 254976  }
  0x5e   : > { %v248_v4 = vunpack.c.0.s8 %v247_v3  ;;  %528 = vmatprep.subr.bf16.mxu0 %v771_v1  ;;  %v228_v12 = vld [vmem:[%s195_s6 + $0x6] sm:$0x3]  ;;  %v244_v13 = vcombine.low %v225_v9, %v226_v10  ;;  %v508_v18 = vld [vmem:[%s1031_s2] ss:$0 sm:$0xff]  ;;  %s221_s9 = scalar_lea.vmem [#allocation7], %s507_s24  ;;  %s774_s10 = smov 96  }
  0x5f   : > { %v245_v14 = vcombine.low %v227_v11, %v228_v12  ;;  %s522_s11 = sshll.u32 %s755_s15, 8  ;;  %s399_s18 = sshll.u32 %s221_s9, 4  ;;  %s978_s18 = int_to_ptr.vmem [resolvable:$true] %s399_s18 }
  0x60   : > { %v251_v8 = vsub.s32 %v248_v4, %v250_v5  ;;  %s976_s8 = scalar_lea.hbm %s1032_s3, %s522_s11  ;;  %s383_s15 = scalar_lea.sflag [#allocation4], %s950_s27 }
  0x61   : > { %529 = vmatpush3.bf16.msra.mxu0 %v618_v7  ;;  %s677_s21 = scalar_lea.vmem %s978_s18, 256  ;;  %s775_s19 = smov [#allocation7]  }
  0x62   : > { %v252_v15 = vrot.slane %v244_v13, %v251_v8  ;;  %v259_v16 = vrot.slane %v245_v14, %v251_v8  ;;  %p678_p13 = scmp.ne.s32.totalorder %s978_s18, %s677_s21  ;;  %s681_s25 = sshll.u32 %s775_s19, 4  ;;  %s682_s25 = int_to_ptr.vmem [resolvable:$false] %s681_s25 }
  0x63   : > { %s683_s29 = scalar_lea.vmem %s682_s25, 512  ;;  %p684_p12 = scmp.lt.s32.totalorder %s978_s18, %s682_s25 }
  0x64   : > { %v260_v17 = vcombine.low %v252_v15, %v259_v16  ;;  %p679_p6 = pnand %p678_p13, %p894_p10  ;;  %p685_p11 = scmp.lt.s32.totalorder %s683_s29, %s677_s21 }
  0x66   : > { %531 = vmatmul.mubr.msk.bf16.vlgmr.msra.gmra.mrb[0].mxu0 %vm273_vm1, %v260_v17  ;;  %p680_p8 = pneg %p679_p6  ;;  %p686_p0 = por %p685_p11, %p684_p12 }
  0x68   : > { %p687_p5 = pnand %p686_p0, %p680_p8 }
 0x139   : > { %v311_v19 = vpop.f32.mrb[0].mxu0 }
 0x13a   : > { %v312_v20 = vadd.f32 %v508_v18, %v311_v19  ;;  %v532_v21 = vpop.f32.mrb[1].mxu0 }
 0x13b   : > { %v314_v22 = vpop.f32.mrb[2].mxu0 }
 0x13c   : > { %v320_v23 = vcombine.high %v312_v20, %v312_v20  ;;  %v324_v24 = vpack.c.bf16 %v312_v20, %v312_v20  ;;  %v315_v25 = vadd.f32 %v508_v18, %v314_v22  ;;  %v533_v26 = vpop.f32.mrb[3].mxu0 }
 0x13e   : > { %v325_v27 = vpack.c.bf16 %v320_v23, %v320_v23  ;;  %329 = vst.msk [vmem:[%s221_s9] sm:$0x3] %vm328_vm2, %v324_v24  ;;  %v321_v28 = vcombine.high %v315_v25, %v315_v25  ;;  %v326_v29 = vpack.c.bf16 %v315_v25, %v315_v25  ;;  %v343_v30 = vrot.slane %v324_v24, %v251_v8 }
 0x140   : > { %330 = vst.msk [vmem:[%s221_s9 + $0x4] sm:$0x3] %vm328_vm2, %v325_v27  ;;  %v327_v31 = vpack.c.bf16 %v321_v28, %v321_v28  ;;  %331 = vst.msk [vmem:[%s221_s9 + $0x8] sm:$0x3] %vm328_vm2, %v326_v29  ;;  %365 = vrot.lane.b32.xlu0 %v343_v30, %s774_s10  ;;  %v357_v32 = vrot.slane %v326_v29, %v251_v8  ;;  %v350_v33 = vrot.slane %v325_v27, %v251_v8 }
 0x142   : > { %332 = vst.msk [vmem:[%s221_s9 + $0xc] sm:$0x3] %vm328_vm2, %v327_v31  ;;  %369 = vrot.lane.b32.xlu1 %v357_v32, %s774_s10  ;;  %v364_v34 = vrot.slane %v327_v31, %v251_v8 }
 0x144   : > { %367 = vrot.lane.b32.xlu0 %v350_v33, %s774_s10 }
 0x146   : > { %371 = vrot.lane.b32.xlu1 %v364_v34, %s774_s10 }
 0x1b2   : > { %v366_v35 = vpop.permute.xlu0 %365 }
 0x1b3   : > { %512 = vst.msk [vmem:[%s221_s9 + $0x2] sm:$0x3] %vm328_vm2, %v366_v35 }
 0x1b4   : > { %v370_v36 = vpop.permute.xlu1 %369 }
 0x1b5   : > { %514 = vst.msk [vmem:[%s221_s9 + $0xa] sm:$0x3] %vm328_vm2, %v370_v36 }
 0x1b6   : > { %v368_v37 = vpop.permute.xlu0 %367 }
 0x1b7   : > { %513 = vst.msk [vmem:[%s221_s9 + $0x6] sm:$0x3] %vm328_vm2, %v368_v37 }
 0x1b8   : > { %v372_v38 = vpop.permute.xlu1 %371 }
 0x1b9   : > { %515 = vst.msk [vmem:[%s221_s9 + $0xe] sm:$0x3] %vm328_vm2, %v372_v38 }
 0x1ba   : > { %690 = shalt.err (!%p687_p5)
}
 0x1bb   : > { %s691_s4 = scalar_lea.hbm %s976_s8, 256  ;;  %s695_s22 = scalar_lea.hbm %s1032_s3, 512 }
 0x1bc   : > { %p692_p9 = scmp.ne.s32.totalorder %s976_s8, %s691_s4  ;;  %p696_p3 = scmp.lt.u32.totalorder %s976_s8, %s1032_s3 }
 0x1bd   : > { %p697_p7 = scmp.lt.u32.totalorder %s695_s22, %s691_s4  ;;  %p699_p13 = scmp.lt.u32.totalorder %s691_s4, %s976_s8 }
 0x1be   : > { %p693_p1 = pnand %p692_p9, %p894_p10 }
 0x1bf   : > { %p698_p4 = por %p697_p7, %p696_p3 }
 0x1c0   : > { %p694_p2 = pneg %p693_p1 }
 0x1c1   : > { %p700_p6 = por %p699_p13, %p698_p4 }
 0x1c3   : > { %p701_p8 = pnand %p700_p6, %p694_p2 }
 0x1c5   : > { %704 = shalt.err (!%p701_p8)
}
 0x1c6   : > { %s776_s10 = smov 32   ;;  %s777_s11 = smov 2  }
 0x1c7   : > { %540 = dma.vmem_to_hbm [thread:$0]  (%p894_p10), %s978_s18, 256, %s976_s8, %s383_s15, %s776_s10, %s776_s10, %s777_s11  }
 0x1c8 PF: > { %s414_s26 = sand.u32 1, %s743_s12   ;;  %p1050_p12 = scmp.ne.s32.totalorder %s1040_s23, 0 }
 0x1c9   : > { %p1051_p11 = scmp.ge.s32.totalorder %s763_s17, 2  ;;  %s415_s7 = scalar_lea.sflag [#allocation4], %s414_s26 }
 0x1cb   : > { %p551_p0 = pnand %p1051_p11, %p1050_p12 }
 0x1cd   : > { %738 = dma.done.wait (!%p551_p0), %s415_s7, 256  }
 0x1ce   : > { %740 = vsyncadd (!%p551_p0), %s415_s7, 4294967040  ;;  %s20_s17 = sadd.s32 1, %s763_s17   ;;  %s1052_s12 = smov %s747_s13 }
 0x1cf   : > { %p17_p5 = scmp.ge.s32.totalorder %s20_s17, 4   ;;  %s1053_s13 = smov %s751_s14 }
 0x1d0   : > { %s1054_s14 = smov %s903_s5  ;;  %s1055_s15 = smov %s759_s16 }
 0x1d1   : > { %s1056_s16 = smov %s1058_s28  ;;  %19 = sbr.rel (!%p17_p5) target bundleno = 7 (0x7), region = 82 }
 0x1d8   :  { %420 = vsyncpa [#allocation3], 1 }
 0x1d9   :  { %422 = vsyncpa [#allocation3 + $0x1], 1 }
 0x1da   :  { %423 = vsyncpa [#allocation6], 1 }
 0x1db   :  { %424 = vsyncpa [#allocation4], 1 }
 0x1dc   :  { %426 = vsyncpa [#allocation4 + $0x1], 1 }

</bundles_post_ra>
